<compile_context>
chip_gen: v5e
topology: v5e:2x2
jax: 0.10.0
libtpu: 0.0.40
codegen_flags: <defaults>
</compile_context>

<pallas_src>
from functools import partial

import numpy as np
import jax
import jax.numpy as jnp
from jax.experimental import pallas as pl
from jax.experimental.pallas import tpu as pltpu


def sista_kernel(params_ref, wts_ref, y_ref, out_ref, *, T, B, dim, num_iters):
    """Whole SISTA recurrence in one kernel invocation (row-major layout).

    params_ref : SMEM f32[2]              -> [lambda_1/alpha, lambda_2/alpha]
    wts_ref    : VMEM (4*dim+B padded, dim) packed slab:
                   rows [0,   dim)   : W^T  with W = V @ A   (folded projection)
                   rows [dim, 2dim)  : P^T
                   rows [2dim,3dim)  : S^T
                   rows [3dim,4dim)  : D^T
                   rows [4dim,4dim+B): h_0_K^T broadcast over batch
    y_ref      : VMEM (T*B, dim)          -> row t*B + b is y[b, :, t]
    out_ref    : VMEM (T*B, dim)          -> row t*B + b is y_re[b, :, t]
    """
    b_thr = params_ref[0]          # lambda_1 / alpha  (soft-threshold level)
    c = params_ref[1]              # lambda_2 / alpha

    # Static slices of the single packed weight slab (free; one DMA upstream).
    Wt = wts_ref[0 * dim:1 * dim, :]
    Pt = wts_ref[1 * dim:2 * dim, :]
    St = wts_ref[2 * dim:3 * dim, :]
    Dt = wts_ref[3 * dim:4 * dim, :]
    h_pre = wts_ref[4 * dim:4 * dim + B, :]                              # (B, dim)

    # ---- input projection for ALL T*B timestep rows in one matmul.
    VX = jnp.dot(y_ref[...], Wt, preferred_element_type=jnp.float32)    # (T*B, dim)

    # ---- hoisted scalar->vector broadcasts (loops below are Python-unrolled).
    c_vec = jnp.full((B, dim), c, dtype=jnp.float32)
    b_pos = jnp.full((B, dim), b_thr, dtype=jnp.float32)
    b_neg = -b_pos

    # ---- serial recurrence over time (fully unrolled; T static & small).
    for t in range(T):
        vx_t = VX[t * B:(t + 1) * B, :]                                  # (B, dim)
        Ph = jnp.dot(h_pre, Pt, preferred_element_type=jnp.float32)      # (B, dim)
        w = vx_t + c_vec * Ph                                            # invariant in inner loop
        h_t = Ph
        for _ in range(num_iters):                                       # unrolled
            z = jnp.dot(h_t, St, preferred_element_type=jnp.float32) + w
            # soft_threshold(z, U=1, b) == sign(z)*relu(|z|-b) == z - clip(z,-b,b)
            # (requires b = lambda_1/alpha >= 0, as in the reference module)
            h_t = z - jnp.maximum(jnp.minimum(z, b_pos), b_neg)
        h_pre = h_t
        # Per-timestep output projection + direct store: no concat, and these
        # independent matmuls can fill MXU slack in the dependent chain.
        out_ref[t * B:(t + 1) * B, :] = jnp.dot(
            h_t, Dt, preferred_element_type=jnp.float32)


@partial(jax.jit, static_argnames=("num_iters",))
def sista_rnn_forward(y, A, D, F, h0, lam1, lam2, alpha, *, num_iters):
    """y: (B, dim, T) float32 — same layout as the PyTorch forward input."""
    B, dim, T = y.shape

    # Weight preprocessing (tiny dim x dim GEMMs) done once, fused under jit.
    I = jnp.eye(dim, dtype=jnp.float32)
    P = D.T @ F @ D
    S = I - (1.0 / alpha) * (D.T @ (A.T @ A + lam2 * I) @ D)
    V = (1.0 / alpha) * (D.T @ A.T)
    W = V @ A                                     # fold V @ (A @ y) into one matrix

    # Pack all small weight operands into ONE VMEM slab -> one input DMA.
    h0_rows = jnp.broadcast_to(jnp.reshape(h0, (1, dim)), (B, dim))
    slab = jnp.concatenate([W.T, P.T, S.T, D.T, h0_rows], axis=0).astype(jnp.float32)
    rows = 4 * dim + B
    rows_pad = ((rows + 7) // 8) * 8
    if rows_pad != rows:
        slab = jnp.pad(slab, ((0, rows_pad - rows), (0, 0)))

    # Row-major layout: row t*B + b carries y[b, :, t]; dim sits on lanes.
    y_flat = jnp.transpose(y, (2, 0, 1)).reshape(T * B, dim).astype(jnp.float32)
    scal = jnp.stack([lam1 / alpha, lam2 / alpha]).astype(jnp.float32)

    out_flat = pl.pallas_call(
        partial(sista_kernel, T=T, B=B, dim=dim, num_iters=num_iters),
        out_shape=jax.ShapeDtypeStruct((T * B, dim), jnp.float32),
        in_specs=[
            pl.BlockSpec(memory_space=pltpu.MemorySpace.SMEM),   # [lam1/a, lam2/a]
            pl.BlockSpec(memory_space=pltpu.MemorySpace.VMEM),   # packed weight slab
            pl.BlockSpec(memory_space=pltpu.MemorySpace.VMEM),   # y_flat
        ],
        out_specs=pl.BlockSpec(memory_space=pltpu.MemorySpace.VMEM),
    )(scal, slab, y_flat)

    # (T*B, dim) -> (T, B, dim) -> (B, dim, T)
    return jnp.transpose(out_flat.reshape(T, B, dim), (1, 2, 0))

    # NOTE: deliberately single-invocation (no grid / megacore split): the
    # bottleneck is the T*(1+num_iters) serial matmul chain, footprint is KiBs.


def sista_rnn_reference(y, params):
    """Pure-JAX reference mirroring the PyTorch forward exactly."""
    A = params["A"]; D = params["D"]; F = params["F"]; h0 = params["h0"]
    lam1 = params["lambda_1"]; lam2 = params["lambda_2"]; alpha = params["alpha"]
    num_iters = params["num_iters"]
    B, dim, T = y.shape
    I = jnp.eye(dim, dtype=jnp.float32)
    P = D.T @ F @ D
    S = I - (1.0 / alpha) * (D.T @ (A.T @ A + lam2 * I) @ D)
    V = (1.0 / alpha) * (D.T @ A.T)
    x = jnp.matmul(A, y)                                                  # (B, m, T)
    h_pre = jnp.broadcast_to(h0[None], (B, dim, 1))
    hs = []
    for t in range(T):
        x_t = x[:, :, t][:, :, None]                                      # (B, m, 1)
        Ph = jnp.matmul(P, h_pre)
        h_t = Ph
        for _ in range(num_iters):
            z = jnp.matmul(S, h_t) + jnp.matmul(V, x_t) + (lam2 / alpha) * Ph
            h_t = jnp.sign(z) * jnp.maximum(jnp.abs(z) - lam1 / alpha, 0.0)
        h_pre = h_t
        hs.append(h_t[:, :, 0])
    h = jnp.stack(hs, axis=-1)                                            # (B, dim, T)
    return jnp.matmul(D, h)


if __name__ == "__main__":
    # Small shapes consistent with the module: dim=32, measurements m=16,
    # batch B=2, sequence T=8, num_iters=3.
    dim, m, B, T, num_iters = 32, 16, 2, 8, 3

    key = jax.random.PRNGKey(0)
    k_a, k_d, k_y = jax.random.split(key, 3)

    params = {
        "A": jax.random.normal(k_a, (m, dim), dtype=jnp.float32) / np.sqrt(dim),
        "D": jax.random.normal(k_d, (dim, dim), dtype=jnp.float32) / np.sqrt(dim),
        "F": jnp.eye(dim, dtype=jnp.float32),
        "h0": jnp.zeros((dim, 1), dtype=jnp.float32),
        "lambda_1": jnp.float32(0.05),
        "lambda_2": jnp.float32(0.02),
        "alpha": jnp.float32(1.0),
        "num_iters": num_iters,
    }
    y = jax.random.normal(k_y, (B, dim, T), dtype=jnp.float32)

    out = jax.block_until_ready(
        sista_rnn_forward(
            y, params["A"], params["D"], params["F"], params["h0"],
            params["lambda_1"], params["lambda_2"], params["alpha"],
            num_iters=num_iters))
    ref = sista_rnn_reference(y, params)
    np.testing.assert_allclose(np.asarray(out), np.asarray(ref), rtol=1e-4, atol=1e-4)
    print("KERNEL_OK")
</pallas_src>

<mosaic_0001>
module attributes {stable_mosaic.version = 11 : i64} {
  func.func @sista_kernel(%arg0: memref<2xf32, #tpu.memory_space<smem>>, %arg1: memref<136x32xf32, #tpu.memory_space<vmem>>, %arg2: memref<16x32xf32, #tpu.memory_space<vmem>>, %arg3: memref<16x32xf32, #tpu.memory_space<vmem>>) attributes {dimension_semantics = [], scalar_prefetch = 0 : i64, scratch_operands = 0 : i64, tpu.core_type = #tpu.core_type<tc>} {
    %c0 = arith.constant 0 : index
    %0 = memref.load %arg0[%c0] : memref<2xf32, #tpu.memory_space<smem>>
    %c1 = arith.constant 1 : index
    %1 = memref.load %arg0[%c1] : memref<2xf32, #tpu.memory_space<smem>>
    %c0_0 = arith.constant 0 : index
    %c0_1 = arith.constant 0 : index
    %2 = vector.load %arg1[%c0_0, %c0_1] : memref<136x32xf32, #tpu.memory_space<vmem>>, vector<32x32xf32>
    %c32 = arith.constant 32 : index
    %c0_2 = arith.constant 0 : index
    %3 = vector.load %arg1[%c32, %c0_2] : memref<136x32xf32, #tpu.memory_space<vmem>>, vector<32x32xf32>
    %c64 = arith.constant 64 : index
    %c0_3 = arith.constant 0 : index
    %4 = vector.load %arg1[%c64, %c0_3] : memref<136x32xf32, #tpu.memory_space<vmem>>, vector<32x32xf32>
    %c96 = arith.constant 96 : index
    %c0_4 = arith.constant 0 : index
    %5 = vector.load %arg1[%c96, %c0_4] : memref<136x32xf32, #tpu.memory_space<vmem>>, vector<32x32xf32>
    %c128 = arith.constant 128 : index
    %c0_5 = arith.constant 0 : index
    %6 = vector.load %arg1[%c128, %c0_5] : memref<136x32xf32, #tpu.memory_space<vmem>>, vector<2x32xf32>
    %c0_6 = arith.constant 0 : index
    %c0_7 = arith.constant 0 : index
    %7 = vector.load %arg2[%c0_6, %c0_7] : memref<16x32xf32, #tpu.memory_space<vmem>>, vector<16x32xf32>
    %cst = arith.constant dense<0.000000e+00> : vector<16x32xf32>
    %8 = tpu.matmul %7, %2, %cst {dimension_numbers = #tpu.dot_dimension_numbers<[1], [0], [0], [1], [0, 0, 1, 1], [], []>} : vector<16x32xf32>, vector<32x32xf32>, vector<16x32xf32> -> vector<16x32xf32>
    %9 = vector.broadcast %1 : f32 to vector<2x32xf32>
    %10 = vector.broadcast %0 : f32 to vector<2x32xf32>
    %cst_8 = arith.constant 0.000000e+00 : f32
    %11 = vector.broadcast %cst_8 : f32 to vector<2x32xf32>
    %12 = arith.subf %11, %10 : vector<2x32xf32>
    %13 = vector.extract_strided_slice %8 {offsets = [0, 0], sizes = [2, 32], strides = [1, 1]} : vector<16x32xf32> to vector<2x32xf32>
    %cst_9 = arith.constant dense<0.000000e+00> : vector<2x32xf32>
    %14 = tpu.matmul %6, %3, %cst_9 {dimension_numbers = #tpu.dot_dimension_numbers<[1], [0], [0], [1], [0, 0, 1, 1], [], []>} : vector<2x32xf32>, vector<32x32xf32>, vector<2x32xf32> -> vector<2x32xf32>
    %15 = arith.mulf %9, %14 : vector<2x32xf32>
    %16 = arith.addf %13, %15 : vector<2x32xf32>
    %cst_10 = arith.constant dense<0.000000e+00> : vector<2x32xf32>
    %17 = tpu.matmul %14, %4, %cst_10 {dimension_numbers = #tpu.dot_dimension_numbers<[1], [0], [0], [1], [0, 0, 1, 1], [], []>} : vector<2x32xf32>, vector<32x32xf32>, vector<2x32xf32> -> vector<2x32xf32>
    %18 = arith.addf %17, %16 : vector<2x32xf32>
    %19 = arith.minimumf %18, %10 : vector<2x32xf32>
    %20 = arith.maximumf %19, %12 : vector<2x32xf32>
    %21 = arith.subf %18, %20 : vector<2x32xf32>
    %cst_11 = arith.constant dense<0.000000e+00> : vector<2x32xf32>
    %22 = tpu.matmul %21, %4, %cst_11 {dimension_numbers = #tpu.dot_dimension_numbers<[1], [0], [0], [1], [0, 0, 1, 1], [], []>} : vector<2x32xf32>, vector<32x32xf32>, vector<2x32xf32> -> vector<2x32xf32>
    %23 = arith.addf %22, %16 : vector<2x32xf32>
    %24 = arith.minimumf %23, %10 : vector<2x32xf32>
    %25 = arith.maximumf %24, %12 : vector<2x32xf32>
    %26 = arith.subf %23, %25 : vector<2x32xf32>
    %cst_12 = arith.constant dense<0.000000e+00> : vector<2x32xf32>
    %27 = tpu.matmul %26, %4, %cst_12 {dimension_numbers = #tpu.dot_dimension_numbers<[1], [0], [0], [1], [0, 0, 1, 1], [], []>} : vector<2x32xf32>, vector<32x32xf32>, vector<2x32xf32> -> vector<2x32xf32>
    %28 = arith.addf %27, %16 : vector<2x32xf32>
    %29 = arith.minimumf %28, %10 : vector<2x32xf32>
    %30 = arith.maximumf %29, %12 : vector<2x32xf32>
    %31 = arith.subf %28, %30 : vector<2x32xf32>
    %cst_13 = arith.constant dense<0.000000e+00> : vector<2x32xf32>
    %32 = tpu.matmul %31, %5, %cst_13 {dimension_numbers = #tpu.dot_dimension_numbers<[1], [0], [0], [1], [0, 0, 1, 1], [], []>} : vector<2x32xf32>, vector<32x32xf32>, vector<2x32xf32> -> vector<2x32xf32>
    %c0_14 = arith.constant 0 : index
    %c0_15 = arith.constant 0 : index
    %33 = vector.load %arg3[%c0_14, %c0_15] : memref<16x32xf32, #tpu.memory_space<vmem>>, vector<2x32xf32>
    tpu.vector_store %arg3[%c0_14, %c0_15], %32 {strides = array<i32>} : memref<16x32xf32, #tpu.memory_space<vmem>>, vector<2x32xf32>,
    %34 = vector.extract_strided_slice %8 {offsets = [2, 0], sizes = [2, 32], strides = [1, 1]} : vector<16x32xf32> to vector<2x32xf32>
    %cst_16 = arith.constant dense<0.000000e+00> : vector<2x32xf32>
    %35 = tpu.matmul %31, %3, %cst_16 {dimension_numbers = #tpu.dot_dimension_numbers<[1], [0], [0], [1], [0, 0, 1, 1], [], []>} : vector<2x32xf32>, vector<32x32xf32>, vector<2x32xf32> -> vector<2x32xf32>
    %36 = arith.mulf %9, %35 : vector<2x32xf32>
    %37 = arith.addf %34, %36 : vector<2x32xf32>
    %cst_17 = arith.constant dense<0.000000e+00> : vector<2x32xf32>
    %38 = tpu.matmul %35, %4, %cst_17 {dimension_numbers = #tpu.dot_dimension_numbers<[1], [0], [0], [1], [0, 0, 1, 1], [], []>} : vector<2x32xf32>, vector<32x32xf32>, vector<2x32xf32> -> vector<2x32xf32>
    %39 = arith.addf %38, %37 : vector<2x32xf32>
    %40 = arith.minimumf %39, %10 : vector<2x32xf32>
    %41 = arith.maximumf %40, %12 : vector<2x32xf32>
    %42 = arith.subf %39, %41 : vector<2x32xf32>
    %cst_18 = arith.constant dense<0.000000e+00> : vector<2x32xf32>
    %43 = tpu.matmul %42, %4, %cst_18 {dimension_numbers = #tpu.dot_dimension_numbers<[1], [0], [0], [1], [0, 0, 1, 1], [], []>} : vector<2x32xf32>, vector<32x32xf32>, vector<2x32xf32> -> vector<2x32xf32>
    %44 = arith.addf %43, %37 : vector<2x32xf32>
    %45 = arith.minimumf %44, %10 : vector<2x32xf32>
    %46 = arith.maximumf %45, %12 : vector<2x32xf32>
    %47 = arith.subf %44, %46 : vector<2x32xf32>
    %cst_19 = arith.constant dense<0.000000e+00> : vector<2x32xf32>
    %48 = tpu.matmul %47, %4, %cst_19 {dimension_numbers = #tpu.dot_dimension_numbers<[1], [0], [0], [1], [0, 0, 1, 1], [], []>} : vector<2x32xf32>, vector<32x32xf32>, vector<2x32xf32> -> vector<2x32xf32>
    %49 = arith.addf %48, %37 : vector<2x32xf32>
    %50 = arith.minimumf %49, %10 : vector<2x32xf32>
    %51 = arith.maximumf %50, %12 : vector<2x32xf32>
    %52 = arith.subf %49, %51 : vector<2x32xf32>
    %cst_20 = arith.constant dense<0.000000e+00> : vector<2x32xf32>
    %53 = tpu.matmul %52, %5, %cst_20 {dimension_numbers = #tpu.dot_dimension_numbers<[1], [0], [0], [1], [0, 0, 1, 1], [], []>} : vector<2x32xf32>, vector<32x32xf32>, vector<2x32xf32> -> vector<2x32xf32>
    %c2 = arith.constant 2 : index
    %c0_21 = arith.constant 0 : index
    %54 = vector.load %arg3[%c2, %c0_21] : memref<16x32xf32, #tpu.memory_space<vmem>>, vector<2x32xf32>
    tpu.vector_store %arg3[%c2, %c0_21], %53 {strides = array<i32>} : memref<16x32xf32, #tpu.memory_space<vmem>>, vector<2x32xf32>,
    %55 = vector.extract_strided_slice %8 {offsets = [4, 0], sizes = [2, 32], strides = [1, 1]} : vector<16x32xf32> to vector<2x32xf32>
    %cst_22 = arith.constant dense<0.000000e+00> : vector<2x32xf32>
    %56 = tpu.matmul %52, %3, %cst_22 {dimension_numbers = #tpu.dot_dimension_numbers<[1], [0], [0], [1], [0, 0, 1, 1], [], []>} : vector<2x32xf32>, vector<32x32xf32>, vector<2x32xf32> -> vector<2x32xf32>
    %57 = arith.mulf %9, %56 : vector<2x32xf32>
    %58 = arith.addf %55, %57 : vector<2x32xf32>
    %cst_23 = arith.constant dense<0.000000e+00> : vector<2x32xf32>
    %59 = tpu.matmul %56, %4, %cst_23 {dimension_numbers = #tpu.dot_dimension_numbers<[1], [0], [0], [1], [0, 0, 1, 1], [], []>} : vector<2x32xf32>, vector<32x32xf32>, vector<2x32xf32> -> vector<2x32xf32>
    %60 = arith.addf %59, %58 : vector<2x32xf32>
    %61 = arith.minimumf %60, %10 : vector<2x32xf32>
    %62 = arith.maximumf %61, %12 : vector<2x32xf32>
    %63 = arith.subf %60, %62 : vector<2x32xf32>
    %cst_24 = arith.constant dense<0.000000e+00> : vector<2x32xf32>
    %64 = tpu.matmul %63, %4, %cst_24 {dimension_numbers = #tpu.dot_dimension_numbers<[1], [0], [0], [1], [0, 0, 1, 1], [], []>} : vector<2x32xf32>, vector<32x32xf32>, vector<2x32xf32> -> vector<2x32xf32>
    %65 = arith.addf %64, %58 : vector<2x32xf32>
    %66 = arith.minimumf %65, %10 : vector<2x32xf32>
    %67 = arith.maximumf %66, %12 : vector<2x32xf32>
    %68 = arith.subf %65, %67 : vector<2x32xf32>
    %cst_25 = arith.constant dense<0.000000e+00> : vector<2x32xf32>
    %69 = tpu.matmul %68, %4, %cst_25 {dimension_numbers = #tpu.dot_dimension_numbers<[1], [0], [0], [1], [0, 0, 1, 1], [], []>} : vector<2x32xf32>, vector<32x32xf32>, vector<2x32xf32> -> vector<2x32xf32>
    %70 = arith.addf %69, %58 : vector<2x32xf32>
    %71 = arith.minimumf %70, %10 : vector<2x32xf32>
    %72 = arith.maximumf %71, %12 : vector<2x32xf32>
    %73 = arith.subf %70, %72 : vector<2x32xf32>
    %cst_26 = arith.constant dense<0.000000e+00> : vector<2x32xf32>
    %74 = tpu.matmul %73, %5, %cst_26 {dimension_numbers = #tpu.dot_dimension_numbers<[1], [0], [0], [1], [0, 0, 1, 1], [], []>} : vector<2x32xf32>, vector<32x32xf32>, vector<2x32xf32> -> vector<2x32xf32>
    %c4 = arith.constant 4 : index
    %c0_27 = arith.constant 0 : index
    %75 = vector.load %arg3[%c4, %c0_27] : memref<16x32xf32, #tpu.memory_space<vmem>>, vector<2x32xf32>
    tpu.vector_store %arg3[%c4, %c0_27], %74 {strides = array<i32>} : memref<16x32xf32, #tpu.memory_space<vmem>>, vector<2x32xf32>,
    %76 = vector.extract_strided_slice %8 {offsets = [6, 0], sizes = [2, 32], strides = [1, 1]} : vector<16x32xf32> to vector<2x32xf32>
    %cst_28 = arith.constant dense<0.000000e+00> : vector<2x32xf32>
    %77 = tpu.matmul %73, %3, %cst_28 {dimension_numbers = #tpu.dot_dimension_numbers<[1], [0], [0], [1], [0, 0, 1, 1], [], []>} : vector<2x32xf32>, vector<32x32xf32>, vector<2x32xf32> -> vector<2x32xf32>
    %78 = arith.mulf %9, %77 : vector<2x32xf32>
    %79 = arith.addf %76, %78 : vector<2x32xf32>
    %cst_29 = arith.constant dense<0.000000e+00> : vector<2x32xf32>
    %80 = tpu.matmul %77, %4, %cst_29 {dimension_numbers = #tpu.dot_dimension_numbers<[1], [0], [0], [1], [0, 0, 1, 1], [], []>} : vector<2x32xf32>, vector<32x32xf32>, vector<2x32xf32> -> vector<2x32xf32>
    %81 = arith.addf %80, %79 : vector<2x32xf32>
    %82 = arith.minimumf %81, %10 : vector<2x32xf32>
    %83 = arith.maximumf %82, %12 : vector<2x32xf32>
    %84 = arith.subf %81, %83 : vector<2x32xf32>
    %cst_30 = arith.constant dense<0.000000e+00> : vector<2x32xf32>
    %85 = tpu.matmul %84, %4, %cst_30 {dimension_numbers = #tpu.dot_dimension_numbers<[1], [0], [0], [1], [0, 0, 1, 1], [], []>} : vector<2x32xf32>, vector<32x32xf32>, vector<2x32xf32> -> vector<2x32xf32>
    %86 = arith.addf %85, %79 : vector<2x32xf32>
    %87 = arith.minimumf %86, %10 : vector<2x32xf32>
    %88 = arith.maximumf %87, %12 : vector<2x32xf32>
    %89 = arith.subf %86, %88 : vector<2x32xf32>
    %cst_31 = arith.constant dense<0.000000e+00> : vector<2x32xf32>
    %90 = tpu.matmul %89, %4, %cst_31 {dimension_numbers = #tpu.dot_dimension_numbers<[1], [0], [0], [1], [0, 0, 1, 1], [], []>} : vector<2x32xf32>, vector<32x32xf32>, vector<2x32xf32> -> vector<2x32xf32>
    %91 = arith.addf %90, %79 : vector<2x32xf32>
    %92 = arith.minimumf %91, %10 : vector<2x32xf32>
    %93 = arith.maximumf %92, %12 : vector<2x32xf32>
    %94 = arith.subf %91, %93 : vector<2x32xf32>
    %cst_32 = arith.constant dense<0.000000e+00> : vector<2x32xf32>
    %95 = tpu.matmul %94, %5, %cst_32 {dimension_numbers = #tpu.dot_dimension_numbers<[1], [0], [0], [1], [0, 0, 1, 1], [], []>} : vector<2x32xf32>, vector<32x32xf32>, vector<2x32xf32> -> vector<2x32xf32>
    %c6 = arith.constant 6 : index
    %c0_33 = arith.constant 0 : index
    %96 = vector.load %arg3[%c6, %c0_33] : memref<16x32xf32, #tpu.memory_space<vmem>>, vector<2x32xf32>
    tpu.vector_store %arg3[%c6, %c0_33], %95 {strides = array<i32>} : memref<16x32xf32, #tpu.memory_space<vmem>>, vector<2x32xf32>,
    %97 = vector.extract_strided_slice %8 {offsets = [8, 0], sizes = [2, 32], strides = [1, 1]} : vector<16x32xf32> to vector<2x32xf32>
    %cst_34 = arith.constant dense<0.000000e+00> : vector<2x32xf32>
    %98 = tpu.matmul %94, %3, %cst_34 {dimension_numbers = #tpu.dot_dimension_numbers<[1], [0], [0], [1], [0, 0, 1, 1], [], []>} : vector<2x32xf32>, vector<32x32xf32>, vector<2x32xf32> -> vector<2x32xf32>
    %99 = arith.mulf %9, %98 : vector<2x32xf32>
    %100 = arith.addf %97, %99 : vector<2x32xf32>
    %cst_35 = arith.constant dense<0.000000e+00> : vector<2x32xf32>
    %101 = tpu.matmul %98, %4, %cst_35 {dimension_numbers = #tpu.dot_dimension_numbers<[1], [0], [0], [1], [0, 0, 1, 1], [], []>} : vector<2x32xf32>, vector<32x32xf32>, vector<2x32xf32> -> vector<2x32xf32>
    %102 = arith.addf %101, %100 : vector<2x32xf32>
    %103 = arith.minimumf %102, %10 : vector<2x32xf32>
    %104 = arith.maximumf %103, %12 : vector<2x32xf32>
    %105 = arith.subf %102, %104 : vector<2x32xf32>
    %cst_36 = arith.constant dense<0.000000e+00> : vector<2x32xf32>
    %106 = tpu.matmul %105, %4, %cst_36 {dimension_numbers = #tpu.dot_dimension_numbers<[1], [0], [0], [1], [0, 0, 1, 1], [], []>} : vector<2x32xf32>, vector<32x32xf32>, vector<2x32xf32> -> vector<2x32xf32>
    %107 = arith.addf %106, %100 : vector<2x32xf32>
    %108 = arith.minimumf %107, %10 : vector<2x32xf32>
    %109 = arith.maximumf %108, %12 : vector<2x32xf32>
    %110 = arith.subf %107, %109 : vector<2x32xf32>
    %cst_37 = arith.constant dense<0.000000e+00> : vector<2x32xf32>
    %111 = tpu.matmul %110, %4, %cst_37 {dimension_numbers = #tpu.dot_dimension_numbers<[1], [0], [0], [1], [0, 0, 1, 1], [], []>} : vector<2x32xf32>, vector<32x32xf32>, vector<2x32xf32> -> vector<2x32xf32>
    %112 = arith.addf %111, %100 : vector<2x32xf32>
    %113 = arith.minimumf %112, %10 : vector<2x32xf32>
    %114 = arith.maximumf %113, %12 : vector<2x32xf32>
    %115 = arith.subf %112, %114 : vector<2x32xf32>
    %cst_38 = arith.constant dense<0.000000e+00> : vector<2x32xf32>
    %116 = tpu.matmul %115, %5, %cst_38 {dimension_numbers = #tpu.dot_dimension_numbers<[1], [0], [0], [1], [0, 0, 1, 1], [], []>} : vector<2x32xf32>, vector<32x32xf32>, vector<2x32xf32> -> vector<2x32xf32>
    %c8 = arith.constant 8 : index
    %c0_39 = arith.constant 0 : index
    %117 = vector.load %arg3[%c8, %c0_39] : memref<16x32xf32, #tpu.memory_space<vmem>>, vector<2x32xf32>
    tpu.vector_store %arg3[%c8, %c0_39], %116 {strides = array<i32>} : memref<16x32xf32, #tpu.memory_space<vmem>>, vector<2x32xf32>,
    %118 = vector.extract_strided_slice %8 {offsets = [10, 0], sizes = [2, 32], strides = [1, 1]} : vector<16x32xf32> to vector<2x32xf32>
    %cst_40 = arith.constant dense<0.000000e+00> : vector<2x32xf32>
    %119 = tpu.matmul %115, %3, %cst_40 {dimension_numbers = #tpu.dot_dimension_numbers<[1], [0], [0], [1], [0, 0, 1, 1], [], []>} : vector<2x32xf32>, vector<32x32xf32>, vector<2x32xf32> -> vector<2x32xf32>
    %120 = arith.mulf %9, %119 : vector<2x32xf32>
    %121 = arith.addf %118, %120 : vector<2x32xf32>
    %cst_41 = arith.constant dense<0.000000e+00> : vector<2x32xf32>
    %122 = tpu.matmul %119, %4, %cst_41 {dimension_numbers = #tpu.dot_dimension_numbers<[1], [0], [0], [1], [0, 0, 1, 1], [], []>} : vector<2x32xf32>, vector<32x32xf32>, vector<2x32xf32> -> vector<2x32xf32>
    %123 = arith.addf %122, %121 : vector<2x32xf32>
    %124 = arith.minimumf %123, %10 : vector<2x32xf32>
    %125 = arith.maximumf %124, %12 : vector<2x32xf32>
    %126 = arith.subf %123, %125 : vector<2x32xf32>
    %cst_42 = arith.constant dense<0.000000e+00> : vector<2x32xf32>
    %127 = tpu.matmul %126, %4, %cst_42 {dimension_numbers = #tpu.dot_dimension_numbers<[1], [0], [0], [1], [0, 0, 1, 1], [], []>} : vector<2x32xf32>, vector<32x32xf32>, vector<2x32xf32> -> vector<2x32xf32>
    %128 = arith.addf %127, %121 : vector<2x32xf32>
    %129 = arith.minimumf %128, %10 : vector<2x32xf32>
    %130 = arith.maximumf %129, %12 : vector<2x32xf32>
    %131 = arith.subf %128, %130 : vector<2x32xf32>
    %cst_43 = arith.constant dense<0.000000e+00> : vector<2x32xf32>
    %132 = tpu.matmul %131, %4, %cst_43 {dimension_numbers = #tpu.dot_dimension_numbers<[1], [0], [0], [1], [0, 0, 1, 1], [], []>} : vector<2x32xf32>, vector<32x32xf32>, vector<2x32xf32> -> vector<2x32xf32>
    %133 = arith.addf %132, %121 : vector<2x32xf32>
    %134 = arith.minimumf %133, %10 : vector<2x32xf32>
    %135 = arith.maximumf %134, %12 : vector<2x32xf32>
    %136 = arith.subf %133, %135 : vector<2x32xf32>
    %cst_44 = arith.constant dense<0.000000e+00> : vector<2x32xf32>
    %137 = tpu.matmul %136, %5, %cst_44 {dimension_numbers = #tpu.dot_dimension_numbers<[1], [0], [0], [1], [0, 0, 1, 1], [], []>} : vector<2x32xf32>, vector<32x32xf32>, vector<2x32xf32> -> vector<2x32xf32>
    %c10 = arith.constant 10 : index
    %c0_45 = arith.constant 0 : index
    %138 = vector.load %arg3[%c10, %c0_45] : memref<16x32xf32, #tpu.memory_space<vmem>>, vector<2x32xf32>
    tpu.vector_store %arg3[%c10, %c0_45], %137 {strides = array<i32>} : memref<16x32xf32, #tpu.memory_space<vmem>>, vector<2x32xf32>,
    %139 = vector.extract_strided_slice %8 {offsets = [12, 0], sizes = [2, 32], strides = [1, 1]} : vector<16x32xf32> to vector<2x32xf32>
    %cst_46 = arith.constant dense<0.000000e+00> : vector<2x32xf32>
    %140 = tpu.matmul %136, %3, %cst_46 {dimension_numbers = #tpu.dot_dimension_numbers<[1], [0], [0], [1], [0, 0, 1, 1], [], []>} : vector<2x32xf32>, vector<32x32xf32>, vector<2x32xf32> -> vector<2x32xf32>
    %141 = arith.mulf %9, %140 : vector<2x32xf32>
    %142 = arith.addf %139, %141 : vector<2x32xf32>
    %cst_47 = arith.constant dense<0.000000e+00> : vector<2x32xf32>
    %143 = tpu.matmul %140, %4, %cst_47 {dimension_numbers = #tpu.dot_dimension_numbers<[1], [0], [0], [1], [0, 0, 1, 1], [], []>} : vector<2x32xf32>, vector<32x32xf32>, vector<2x32xf32> -> vector<2x32xf32>
    %144 = arith.addf %143, %142 : vector<2x32xf32>
    %145 = arith.minimumf %144, %10 : vector<2x32xf32>
    %146 = arith.maximumf %145, %12 : vector<2x32xf32>
    %147 = arith.subf %144, %146 : vector<2x32xf32>
    %cst_48 = arith.constant dense<0.000000e+00> : vector<2x32xf32>
    %148 = tpu.matmul %147, %4, %cst_48 {dimension_numbers = #tpu.dot_dimension_numbers<[1], [0], [0], [1], [0, 0, 1, 1], [], []>} : vector<2x32xf32>, vector<32x32xf32>, vector<2x32xf32> -> vector<2x32xf32>
    %149 = arith.addf %148, %142 : vector<2x32xf32>
    %150 = arith.minimumf %149, %10 : vector<2x32xf32>
    %151 = arith.maximumf %150, %12 : vector<2x32xf32>
    %152 = arith.subf %149, %151 : vector<2x32xf32>
    %cst_49 = arith.constant dense<0.000000e+00> : vector<2x32xf32>
    %153 = tpu.matmul %152, %4, %cst_49 {dimension_numbers = #tpu.dot_dimension_numbers<[1], [0], [0], [1], [0, 0, 1, 1], [], []>} : vector<2x32xf32>, vector<32x32xf32>, vector<2x32xf32> -> vector<2x32xf32>
    %154 = arith.addf %153, %142 : vector<2x32xf32>
    %155 = arith.minimumf %154, %10 : vector<2x32xf32>
    %156 = arith.maximumf %155, %12 : vector<2x32xf32>
    %157 = arith.subf %154, %156 : vector<2x32xf32>
    %cst_50 = arith.constant dense<0.000000e+00> : vector<2x32xf32>
    %158 = tpu.matmul %157, %5, %cst_50 {dimension_numbers = #tpu.dot_dimension_numbers<[1], [0], [0], [1], [0, 0, 1, 1], [], []>} : vector<2x32xf32>, vector<32x32xf32>, vector<2x32xf32> -> vector<2x32xf32>
    %c12 = arith.constant 12 : index
    %c0_51 = arith.constant 0 : index
    %159 = vector.load %arg3[%c12, %c0_51] : memref<16x32xf32, #tpu.memory_space<vmem>>, vector<2x32xf32>
    tpu.vector_store %arg3[%c12, %c0_51], %158 {strides = array<i32>} : memref<16x32xf32, #tpu.memory_space<vmem>>, vector<2x32xf32>,
    %160 = vector.extract_strided_slice %8 {offsets = [14, 0], sizes = [2, 32], strides = [1, 1]} : vector<16x32xf32> to vector<2x32xf32>
    %cst_52 = arith.constant dense<0.000000e+00> : vector<2x32xf32>
    %161 = tpu.matmul %157, %3, %cst_52 {dimension_numbers = #tpu.dot_dimension_numbers<[1], [0], [0], [1], [0, 0, 1, 1], [], []>} : vector<2x32xf32>, vector<32x32xf32>, vector<2x32xf32> -> vector<2x32xf32>
    %162 = arith.mulf %9, %161 : vector<2x32xf32>
    %163 = arith.addf %160, %162 : vector<2x32xf32>
    %cst_53 = arith.constant dense<0.000000e+00> : vector<2x32xf32>
    %164 = tpu.matmul %161, %4, %cst_53 {dimension_numbers = #tpu.dot_dimension_numbers<[1], [0], [0], [1], [0, 0, 1, 1], [], []>} : vector<2x32xf32>, vector<32x32xf32>, vector<2x32xf32> -> vector<2x32xf32>
    %165 = arith.addf %164, %163 : vector<2x32xf32>
    %166 = arith.minimumf %165, %10 : vector<2x32xf32>
    %167 = arith.maximumf %166, %12 : vector<2x32xf32>
    %168 = arith.subf %165, %167 : vector<2x32xf32>
    %cst_54 = arith.constant dense<0.000000e+00> : vector<2x32xf32>
    %169 = tpu.matmul %168, %4, %cst_54 {dimension_numbers = #tpu.dot_dimension_numbers<[1], [0], [0], [1], [0, 0, 1, 1], [], []>} : vector<2x32xf32>, vector<32x32xf32>, vector<2x32xf32> -> vector<2x32xf32>
    %170 = arith.addf %169, %163 : vector<2x32xf32>
    %171 = arith.minimumf %170, %10 : vector<2x32xf32>
    %172 = arith.maximumf %171, %12 : vector<2x32xf32>
    %173 = arith.subf %170, %172 : vector<2x32xf32>
    %cst_55 = arith.constant dense<0.000000e+00> : vector<2x32xf32>
    %174 = tpu.matmul %173, %4, %cst_55 {dimension_numbers = #tpu.dot_dimension_numbers<[1], [0], [0], [1], [0, 0, 1, 1], [], []>} : vector<2x32xf32>, vector<32x32xf32>, vector<2x32xf32> -> vector<2x32xf32>
    %175 = arith.addf %174, %163 : vector<2x32xf32>
    %176 = arith.minimumf %175, %10 : vector<2x32xf32>
    %177 = arith.maximumf %176, %12 : vector<2x32xf32>
    %178 = arith.subf %175, %177 : vector<2x32xf32>
    %cst_56 = arith.constant dense<0.000000e+00> : vector<2x32xf32>
    %179 = tpu.matmul %178, %5, %cst_56 {dimension_numbers = #tpu.dot_dimension_numbers<[1], [0], [0], [1], [0, 0, 1, 1], [], []>} : vector<2x32xf32>, vector<32x32xf32>, vector<2x32xf32> -> vector<2x32xf32>
    %c14 = arith.constant 14 : index
    %c0_57 = arith.constant 0 : index
    %180 = vector.load %arg3[%c14, %c0_57] : memref<16x32xf32, #tpu.memory_space<vmem>>, vector<2x32xf32>
    tpu.vector_store %arg3[%c14, %c0_57], %179 {strides = array<i32>} : memref<16x32xf32, #tpu.memory_space<vmem>>, vector<2x32xf32>,
    return
  }
}

</mosaic_0001>

<bundles_post_ra>
// kernel: sista_rnn_forward.1
= control target key start
LH: loop header
LB: loop body
LE: loop exit
PB: predicated region body
PF: predicated region fallthrough
CT: control target
= control target key end

     0   :  { %8 = vsyncpa [#allocation3], 0  ;;  %s1176_s15 = smov [#allocation2]   ;;  %s1590_s0 = inlined_call_operand.vmem [shape: f32[2], index: 0, kind: input, shape index: {}]   ;;  %s1591_s1 = inlined_call_operand.vmem [shape: f32[136,32], index: 1, kind: input, shape index: {}]   ;;  %s1592_s2 = inlined_call_operand.vmem [shape: f32[16,32], index: 2, kind: input, shape index: {}]   ;;  %s1593_s3 = inlined_call_operand.vmem [shape: f32[16,32], index: 3, kind: output, shape index: {}]  }
   0x1   :  { %s14_s14 = sshll.u32 %s1590_s0, 4  ;;  %s15_s14 = int_to_ptr.vmem [resolvable:$true] %s14_s14 }
   0x2   :  { %17 = dma.vmem_to_smem %s15_s14, 16, %s1176_s15, [#allocation3]  }
   0x3   :  { %1174 = dma.done.wait [#allocation3], 16  }
   0x4   :  { %1175 = vsyncadd [#allocation3], 4294967280 }
   0x5   :  { %26 = sfence }
   0x6   :  { %v1203_v0 = vld [vmem:[%s1591_s1 + $0x38] sm:$0xff]  ;;  %v1211_v2 = vld [vmem:[%s1591_s1 + $0x30] sm:$0xff]  ;;  %v1220_v4 = vld [vmem:[%s1591_s1 + $0x28] sm:$0xff]  ;;  %vm48_vm0 = vcmask 261120   ;;  %s1118_s16 = sld [smem:[#allocation2 + $0x1]]  ;;  %vm207_vm1 = vcmask 254976  }
   0x7   :  { %v32_v1 = vld [vmem:[%s1591_s1 + $0x18] sm:$0xff]  ;;  %96 = vmatpush.msra.mxu1 %v1203_v0  ;;  %v31_v3 = vld [vmem:[%s1591_s1 + $0x10] sm:$0xff]  ;;  %v30_v5 = vld [vmem:[%s1591_s1 + $0x8] sm:$0xff]  ;;  %s27_s17 = sld [smem:[#allocation2]] }
   0x8   :  { %67 = vmatpush.msra.mxu0 %v32_v1  ;;  %v1229_v6 = vld [vmem:[%s1591_s1 + $0x58] sm:$0xff]  ;;  %v1234_v7 = vld [vmem:[%s1591_s1 + $0x50] sm:$0xff]  ;;  %v1239_v8 = vld [vmem:[%s1591_s1 + $0x20] sm:$0xff] }
   0x9   :  { %97 = vmatpush.msra.mxu1 %v1211_v2  ;;  %v29_v9 = vld [vmem:[%s1591_s1] sm:$0xff]  ;;  %121 = vmatpush.msra.mxu2 %v1229_v6  ;;  %v1257_v12 = vld [vmem:[%s1591_s1 + $0x48] sm:$0xff]  ;;  %v1317_v31 = vld [vmem:[%s1591_s1 + $0x78] sm:$0xff] }
   0xa   :  { %68 = vmatpush.msra.mxu0 %v31_v3  ;;  %147 = vmatpush.msra.mxu3 %v1229_v6  ;;  %v45_v10 = vld [vmem:[%s1591_s1 + $0x80] sm:$0x3]  ;;  %v1324_v32 = vld [vmem:[%s1591_s1 + $0x70] sm:$0xff]  ;;  %v1331_v33 = vld [vmem:[%s1591_s1 + $0x68] sm:$0xff] }
   0xb   :  { %98 = vmatpush.msra.mxu1 %v1220_v4  ;;  %v46_v11 = vld [vmem:[%s1592_s2] sm:$0xff]  ;;  %122 = vmatpush.msra.mxu2 %v1234_v7  ;;  %v47_v35 = vld [vmem:[%s1592_s2 + $0x8] sm:$0xff] }
   0xc   :  { %69 = vmatpush.msra.mxu0 %v30_v5  ;;  %148 = vmatpush.msra.mxu3 %v1234_v7  ;;  %v1274_v13 = vld [vmem:[%s1591_s1 + $0x40] sm:$0xff]  ;;  %v1293_v15 = vstv %s1118_s16 }
   0xd   :  { %99 = vmatpush.msra.mxu1 %v1239_v8  ;;  %123 = vmatpush.msra.mxu2 %v1257_v12  ;;  %v1298_v18 = vstv %s27_s17  ;;  %v1338_v34 = vld [vmem:[%s1591_s1 + $0x60] sm:$0xff] }
   0xe   :  { %70 = vmatpush.msra.mxu0 %v29_v9  ;;  %1121 = vmatmul.msk.f32.vlgmr.msra.gmra.mxu1 %vm48_vm0, %v45_v10  ;;  %v1302_v21 = vsub.f32 0.0, %v1298_v18 }
   0xf   :  { %1119 = vmatmul.msk.f32.vlgmr.msra.gmra.mxu0 %vm48_vm0, %v46_v11  ;;  %149 = vmatpush.msra.mxu3 %v1257_v12 }
  0x10   :  { %173 = vmatpush.msrb.mxu1 %v1229_v6  ;;  %252 = vmatpush.msrb.mxu0 %v1229_v6 }
  0x11   :  { %124 = vmatpush.msra.mxu2 %v1274_v13  ;;  %150 = vmatpush.msra.mxu3 %v1274_v13 }
  0x12   :  { %174 = vmatpush.msrb.mxu1 %v1234_v7  ;;  %253 = vmatpush.msrb.mxu0 %v1234_v7 }
  0x13   :  { %221 = vmatpush.msrb.mxu3 %v1203_v0  ;;  %199 = vmatpush.msrb.mxu2 %v1317_v31 }
  0x14   :  { %175 = vmatpush.msrb.mxu1 %v1257_v12  ;;  %254 = vmatpush.msrb.mxu0 %v1257_v12 }
  0x15   :  { %222 = vmatpush.msrb.mxu3 %v1211_v2  ;;  %200 = vmatpush.msrb.mxu2 %v1324_v32 }
  0x16   :  { %176 = vmatpush.msrb.mxu1 %v1274_v13  ;;  %255 = vmatpush.msrb.mxu0 %v1274_v13 }
  0x17   :  { %223 = vmatpush.msrb.mxu3 %v1220_v4  ;;  %201 = vmatpush.msrb.mxu2 %v1331_v33 }
  0x18   :  { %278 = vmatpush.msra.mxu1 %v1229_v6  ;;  %351 = vmatpush.msra.mxu0 %v1203_v0 }
  0x19   :  { %224 = vmatpush.msrb.mxu3 %v1239_v8  ;;  %202 = vmatpush.msrb.mxu2 %v1338_v34 }
  0x1a   :  { %279 = vmatpush.msra.mxu1 %v1234_v7  ;;  %352 = vmatpush.msra.mxu0 %v1211_v2 }
  0x1b   :  { %1120 = vmatmul.msk.f32.gmra.mxu0 %vm48_vm0, %v47_v35 }
  0x1c   :  { %280 = vmatpush.msra.mxu1 %v1257_v12  ;;  %353 = vmatpush.msra.mxu0 %v1220_v4 }
  0x1e   :  { %281 = vmatpush.msra.mxu1 %v1274_v13  ;;  %354 = vmatpush.msra.mxu0 %v1239_v8 }
  0x8b   :  { %v101_v14 = vpop.f32.mrf.mxu1 }
  0x8c   :  { %1122 = vmatmul.msk.f32.vlgmr.msra.gmra.mxu2 %vm48_vm0, %v101_v14  ;;  %v104_v16 = vmul.f32 %v101_v14, %v1293_v15  ;;  %v1296_v17 = vpop.f32.mrf.mxu0 }
  0x8d   :  { %304 = vmatpush.msra.mxu2 %v1229_v6 }
  0x8e   :  { %v105_v19 = vadd.f32 %v104_v16, %v1296_v17 }
  0x8f   :  { %305 = vmatpush.msra.mxu2 %v1234_v7 }
  0x91   :  { %306 = vmatpush.msra.mxu2 %v1257_v12 }
  0x93   :  { %307 = vmatpush.msra.mxu2 %v1274_v13 }
  0x98   :  { %v1372_v44 = vpop.f32.mrf.mxu0 }
 0x10f   :  { %v126_v20 = vpop.f32.mrf.mxu2 }
 0x110   :  { %v127_v22 = vadd.f32 %v126_v20, %v105_v19 }
 0x112   :  { %v129_v23 = vmin.f32 %v127_v22, %v1298_v18 }
 0x114   :  { %v130_v24 = vmax.f32 %v129_v23, %v1302_v21 }
 0x116   :  { %v131_v25 = vsub.f32 %v127_v22, %v130_v24 }
 0x118   :  { %1123 = vmatmul.msk.f32.vlgmr.msra.gmra.mxu3 %vm48_vm0, %v131_v25 }
 0x119   :  { %330 = vmatpush.msra.mxu3 %v1317_v31 }
 0x11b   :  { %331 = vmatpush.msra.mxu3 %v1324_v32 }
 0x11d   :  { %332 = vmatpush.msra.mxu3 %v1331_v33 }
 0x11f   :  { %333 = vmatpush.msra.mxu3 %v1338_v34 }
 0x19b   :  { %v152_v26 = vpop.f32.mrf.mxu3 }
 0x19c   :  { %v153_v27 = vadd.f32 %v152_v26, %v105_v19 }
 0x19e   :  { %v155_v28 = vmin.f32 %v153_v27, %v1298_v18 }
 0x1a0   :  { %v156_v29 = vmax.f32 %v155_v28, %v1302_v21 }
 0x1a2   :  { %v157_v30 = vsub.f32 %v153_v27, %v156_v29 }
 0x1a4   :  { %1124 = vmatmul.msk.f32.vlgmr.msrb.gmra.mxu1 %vm48_vm0, %v157_v30 }
 0x1a5   :  { %382 = vmatpush.msrb.mxu1 %v1229_v6 }
 0x1a7   :  { %383 = vmatpush.msrb.mxu1 %v1234_v7 }
 0x1a9   :  { %384 = vmatpush.msrb.mxu1 %v1257_v12 }
 0x1ab   :  { %385 = vmatpush.msrb.mxu1 %v1274_v13 }
 0x221   :  { %v178_v36 = vpop.f32.mrf.mxu1 }
 0x222   :  { %v179_v37 = vadd.f32 %v178_v36, %v105_v19 }
 0x224   :  { %v181_v38 = vmin.f32 %v179_v37, %v1298_v18 }
 0x226   :  { %v182_v39 = vmax.f32 %v181_v38, %v1302_v21 }
 0x228   :  { %v183_v40 = vsub.f32 %v179_v37, %v182_v39 }
 0x22a   :  { %1125 = vmatmul.msk.f32.vlgmr.msrb.gmra.mxu2 %vm48_vm0, %v183_v40  ;;  %1126 = vmatmul.msk.f32.vlgmr.msrb.gmra.mxu3 %vm48_vm0, %v183_v40 }
 0x22b   :  { %408 = vmatpush.msrb.mxu2 %v1229_v6  ;;  %434 = vmatpush.msrb.mxu3 %v1229_v6 }
 0x22d   :  { %409 = vmatpush.msrb.mxu2 %v1234_v7  ;;  %435 = vmatpush.msrb.mxu3 %v1234_v7 }
 0x22f   :  { %410 = vmatpush.msrb.mxu2 %v1257_v12  ;;  %436 = vmatpush.msrb.mxu3 %v1257_v12 }
 0x231   :  { %411 = vmatpush.msrb.mxu2 %v1274_v13  ;;  %437 = vmatpush.msrb.mxu3 %v1274_v13 }
 0x2ad   :  { %v204_v41 = vpop.f32.mrf.mxu2  ;;  %v226_v42 = vpop.f32.mrf.mxu3 }
 0x2ae   :  { %208 = vst.msk [vmem:[%s1593_s3] sm:$0x3] %vm207_vm1, %v204_v41  ;;  %1127 = vmatmul.msk.f32.vlgmr.msrb.gmra.mxu0 %vm48_vm0, %v226_v42  ;;  %v229_v43 = vmul.f32 %v226_v42, %v1293_v15 }
 0x2af   :  { %460 = vmatpush.msrb.mxu0 %v1317_v31 }
 0x2b0   :  { %v231_v45 = vrot.slane %v229_v43, 6 }
 0x2b1   :  { %461 = vmatpush.msrb.mxu0 %v1324_v32 }
 0x2b2   :  { %v233_v46 = vadd.f32 %v231_v45, %v1296_v17 }
 0x2b3   :  { %462 = vmatpush.msrb.mxu0 %v1331_v33 }
 0x2b4   :  { %v235_v47 = vrot.slane %v233_v46, 2 }
 0x2b5   :  { %463 = vmatpush.msrb.mxu0 %v1338_v34 }
 0x32b   :  { %v257_v48 = vpop.f32.mrf.mxu0 }
 0x32c   :  { %v258_v49 = vadd.f32 %v257_v48, %v235_v47 }
 0x32e   :  { %v260_v50 = vmin.f32 %v258_v49, %v1298_v18 }
 0x330   :  { %v261_v51 = vmax.f32 %v260_v50, %v1302_v21 }
 0x332   :  { %v262_v52 = vsub.f32 %v258_v49, %v261_v51 }
 0x334   :  { %1128 = vmatmul.msk.f32.vlgmr.msra.gmra.mxu1 %vm48_vm0, %v262_v52 }
 0x335   :  { %481 = vmatpush.msra.mxu1 %v1203_v0 }
 0x337   :  { %482 = vmatpush.msra.mxu1 %v1211_v2 }
 0x339   :  { %483 = vmatpush.msra.mxu1 %v1220_v4 }
 0x33b   :  { %484 = vmatpush.msra.mxu1 %v1239_v8 }
 0x3b1   :  { %v283_v53 = vpop.f32.mrf.mxu1 }
 0x3b2   :  { %v284_v54 = vadd.f32 %v283_v53, %v235_v47 }
 0x3b4   :  { %v286_v55 = vmin.f32 %v284_v54, %v1298_v18 }
 0x3b6   :  { %v287_v56 = vmax.f32 %v286_v55, %v1302_v21 }
 0x3b8   :  { %v288_v57 = vsub.f32 %v284_v54, %v287_v56 }
 0x3ba   :  { %1129 = vmatmul.msk.f32.vlgmr.msra.gmra.mxu2 %vm48_vm0, %v288_v57 }
 0x3bb   :  { %512 = vmatpush.msra.mxu2 %v1229_v6 }
 0x3bd   :  { %513 = vmatpush.msra.mxu2 %v1234_v7 }
 0x3bf   :  { %514 = vmatpush.msra.mxu2 %v1257_v12 }
 0x3c1   :  { %515 = vmatpush.msra.mxu2 %v1274_v13 }
 0x43d   :  { %v309_v58 = vpop.f32.mrf.mxu2 }
 0x43e   :  { %v310_v59 = vadd.f32 %v309_v58, %v235_v47 }
 0x440   :  { %v312_v60 = vmin.f32 %v310_v59, %v1298_v18 }
 0x442   :  { %v313_v61 = vmax.f32 %v312_v60, %v1302_v21 }
 0x444   :  { %v314_v62 = vsub.f32 %v310_v59, %v313_v61 }
 0x446   :  { %1130 = vmatmul.msk.f32.vlgmr.msra.gmra.mxu3 %vm48_vm0, %v314_v62  ;;  %1131 = vmatmul.msk.f32.vlgmr.msra.gmra.mxu0 %vm48_vm0, %v314_v62 }
 0x447   :  { %538 = vmatpush.msra.mxu3 %v1229_v6  ;;  %564 = vmatpush.msra.mxu0 %v1229_v6 }
 0x449   :  { %539 = vmatpush.msra.mxu3 %v1234_v7  ;;  %565 = vmatpush.msra.mxu0 %v1234_v7 }
 0x44b   :  { %540 = vmatpush.msra.mxu3 %v1257_v12  ;;  %566 = vmatpush.msra.mxu0 %v1257_v12 }
 0x44d   :  { %541 = vmatpush.msra.mxu3 %v1274_v13  ;;  %567 = vmatpush.msra.mxu0 %v1274_v13 }
 0x4c3   :  { %v356_v63 = vpop.f32.mrf.mxu0 }
 0x4c4   :  { %1132 = vmatmul.msk.f32.vlgmr.msrb.gmra.mxu1 %vm48_vm0, %v356_v63  ;;  %v359_v3 = vmul.f32 %v356_v63, %v1293_v15 }
 0x4c5   :  { %590 = vmatpush.msrb.mxu1 %v1317_v31 }
 0x4c6   :  { %v361_v5 = vrot.slane %v359_v3, 4 }
 0x4c7   :  { %591 = vmatpush.msrb.mxu1 %v1324_v32 }
 0x4c8   :  { %v363_v9 = vadd.f32 %v361_v5, %v1296_v17 }
 0x4c9   :  { %v335_v1 = vpop.f32.mrf.mxu3  ;;  %592 = vmatpush.msrb.mxu1 %v1331_v33 }
 0x4ca   :  { %338 = vst.msk [vmem:[%s1593_s3 + $0x2] sm:$0x3] %vm207_vm1, %v335_v1  ;;  %v365_v10 = vrot.slane %v363_v9, 4 }
 0x4cb   :  { %593 = vmatpush.msrb.mxu1 %v1338_v34 }
 0x541   :  { %v387_v11 = vpop.f32.mrf.mxu1 }
 0x542   :  { %v388_v14 = vadd.f32 %v387_v11, %v365_v10 }
 0x544   :  { %v390_v16 = vmin.f32 %v388_v14, %v1298_v18 }
 0x546   :  { %v391_v19 = vmax.f32 %v390_v16, %v1302_v21 }
 0x548   :  { %v392_v20 = vsub.f32 %v388_v14, %v391_v19 }
 0x54a   :  { %1133 = vmatmul.msk.f32.vlgmr.msrb.gmra.mxu2 %vm48_vm0, %v392_v20 }
 0x54b   :  { %611 = vmatpush.msrb.mxu2 %v1203_v0 }
 0x54d   :  { %612 = vmatpush.msrb.mxu2 %v1211_v2 }
 0x54f   :  { %613 = vmatpush.msrb.mxu2 %v1220_v4 }
 0x551   :  { %614 = vmatpush.msrb.mxu2 %v1239_v8 }
 0x5cd   :  { %v413_v22 = vpop.f32.mrf.mxu2 }
 0x5ce   :  { %v414_v23 = vadd.f32 %v413_v22, %v365_v10 }
 0x5d0   :  { %v416_v24 = vmin.f32 %v414_v23, %v1298_v18 }
 0x5d2   :  { %v417_v25 = vmax.f32 %v416_v24, %v1302_v21 }
 0x5d4   :  { %v418_v26 = vsub.f32 %v414_v23, %v417_v25 }
 0x5d6   :  { %1134 = vmatmul.msk.f32.vlgmr.msrb.gmra.mxu3 %vm48_vm0, %v418_v26 }
 0x5d7   :  { %636 = vmatpush.msrb.mxu3 %v1229_v6 }
 0x5d9   :  { %637 = vmatpush.msrb.mxu3 %v1234_v7 }
 0x5db   :  { %638 = vmatpush.msrb.mxu3 %v1257_v12 }
 0x5dd   :  { %639 = vmatpush.msrb.mxu3 %v1274_v13 }
 0x659   :  { %v439_v27 = vpop.f32.mrf.mxu3 }
 0x65a   :  { %v440_v28 = vadd.f32 %v439_v27, %v365_v10 }
 0x65c   :  { %v442_v29 = vmin.f32 %v440_v28, %v1298_v18 }
 0x65e   :  { %v443_v30 = vmax.f32 %v442_v29, %v1302_v21 }
 0x660   :  { %v444_v35 = vsub.f32 %v440_v28, %v443_v30 }
 0x662   :  { %1135 = vmatmul.msk.f32.vlgmr.msrb.gmra.mxu0 %vm48_vm0, %v444_v35  ;;  %1136 = vmatmul.msk.f32.vlgmr.msra.gmra.mxu1 %vm48_vm0, %v444_v35 }
 0x663   :  { %662 = vmatpush.msrb.mxu0 %v1229_v6  ;;  %688 = vmatpush.msra.mxu1 %v1229_v6 }
 0x665   :  { %663 = vmatpush.msrb.mxu0 %v1234_v7  ;;  %689 = vmatpush.msra.mxu1 %v1234_v7 }
 0x667   :  { %664 = vmatpush.msrb.mxu0 %v1257_v12  ;;  %690 = vmatpush.msra.mxu1 %v1257_v12 }
 0x669   :  { %665 = vmatpush.msrb.mxu0 %v1274_v13  ;;  %691 = vmatpush.msra.mxu1 %v1274_v13 }
 0x6df   :  { %v465_v36 = vpop.f32.mrf.mxu0  ;;  %v486_v37 = vpop.f32.mrf.mxu1 }
 0x6e0   :  { %468 = vst.msk [vmem:[%s1593_s3 + $0x4] sm:$0x3] %vm207_vm1, %v465_v36  ;;  %1137 = vmatmul.msk.f32.vlgmr.msra.gmra.mxu2 %vm48_vm0, %v486_v37  ;;  %v489_v38 = vmul.f32 %v486_v37, %v1293_v15 }
 0x6e1   :  { %714 = vmatpush.msra.mxu2 %v1317_v31 }
 0x6e2   :  { %v491_v39 = vrot.slane %v489_v38, 2 }
 0x6e3   :  { %715 = vmatpush.msra.mxu2 %v1324_v32 }
 0x6e4   :  { %v493_v40 = vadd.f32 %v491_v39, %v1296_v17 }
 0x6e5   :  { %716 = vmatpush.msra.mxu2 %v1331_v33 }
 0x6e6   :  { %v495_v41 = vrot.slane %v493_v40, 6 }
 0x6e7   :  { %717 = vmatpush.msra.mxu2 %v1338_v34 }
 0x763   :  { %v517_v42 = vpop.f32.mrf.mxu2 }
 0x764   :  { %v518_v43 = vadd.f32 %v517_v42, %v495_v41 }
 0x766   :  { %v520_v45 = vmin.f32 %v518_v43, %v1298_v18 }
 0x768   :  { %v521_v46 = vmax.f32 %v520_v45, %v1302_v21 }
 0x76a   :  { %v522_v47 = vsub.f32 %v518_v43, %v521_v46 }
 0x76c   :  { %1138 = vmatmul.msk.f32.vlgmr.msra.gmra.mxu3 %vm48_vm0, %v522_v47 }
 0x76d   :  { %735 = vmatpush.msra.mxu3 %v1203_v0 }
 0x76f   :  { %736 = vmatpush.msra.mxu3 %v1211_v2 }
 0x771   :  { %737 = vmatpush.msra.mxu3 %v1220_v4 }
 0x773   :  { %738 = vmatpush.msra.mxu3 %v1239_v8 }
 0x7ef   :  { %v543_v48 = vpop.f32.mrf.mxu3 }
 0x7f0   :  { %v544_v17 = vadd.f32 %v543_v48, %v495_v41 }
 0x7f2   :  { %v546_v49 = vmin.f32 %v544_v17, %v1298_v18 }
 0x7f4   :  { %v547_v50 = vmax.f32 %v546_v49, %v1302_v21 }
 0x7f6   :  { %v548_v51 = vsub.f32 %v544_v17, %v547_v50 }
 0x7f8   :  { %1139 = vmatmul.msk.f32.vlgmr.msra.gmra.mxu0 %vm48_vm0, %v548_v51 }
 0x7f9   :  { %766 = vmatpush.msra.mxu0 %v1229_v6 }
 0x7fb   :  { %767 = vmatpush.msra.mxu0 %v1234_v7 }
 0x7fd   :  { %768 = vmatpush.msra.mxu0 %v1257_v12 }
 0x7ff   :  { %769 = vmatpush.msra.mxu0 %v1274_v13 }
 0x875   :  { %v569_v52 = vpop.f32.mrf.mxu0 }
 0x876   :  { %v570_v53 = vadd.f32 %v569_v52, %v495_v41 }
 0x878   :  { %v572_v54 = vmin.f32 %v570_v53, %v1298_v18 }
 0x87a   :  { %v573_v55 = vmax.f32 %v572_v54, %v1302_v21 }
 0x87c   :  { %v574_v56 = vsub.f32 %v570_v53, %v573_v55 }
 0x87e   :  { %1140 = vmatmul.msk.f32.vlgmr.msrb.gmra.mxu1 %vm48_vm0, %v574_v56  ;;  %1141 = vmatmul.msk.f32.vlgmr.msrb.gmra.mxu2 %vm48_vm0, %v574_v56 }
 0x87f   :  { %792 = vmatpush.msrb.mxu1 %v1229_v6  ;;  %818 = vmatpush.msrb.mxu2 %v1229_v6 }
 0x881   :  { %793 = vmatpush.msrb.mxu1 %v1234_v7  ;;  %819 = vmatpush.msrb.mxu2 %v1234_v7 }
 0x883   :  { %794 = vmatpush.msrb.mxu1 %v1257_v12  ;;  %820 = vmatpush.msrb.mxu2 %v1257_v12 }
 0x885   :  { %795 = vmatpush.msrb.mxu1 %v1274_v13  ;;  %821 = vmatpush.msrb.mxu2 %v1274_v13 }
 0x8fb   :  { %v595_v57 = vpop.f32.mrf.mxu1 }
 0x8fc   :  { %598 = vst.msk [vmem:[%s1593_s3 + $0x6] sm:$0x3] %vm207_vm1, %v595_v57 }
 0x901   :  { %v616_v58 = vpop.f32.mrf.mxu2 }
 0x902   :  { %1142 = vmatmul.msk.f32.vlgmr.msrb.gmra.mxu3 %vm48_vm0, %v616_v58  ;;  %v619_v59 = vmul.f32 %v616_v58, %v1293_v15 }
 0x903   :  { %844 = vmatpush.msrb.mxu3 %v1317_v31 }
 0x904   :  { %v620_v60 = vadd.f32 %v619_v59, %v1372_v44 }
 0x905   :  { %845 = vmatpush.msrb.mxu3 %v1324_v32 }
 0x907   :  { %846 = vmatpush.msrb.mxu3 %v1331_v33 }
 0x909   :  { %847 = vmatpush.msrb.mxu3 %v1338_v34 }
 0x985   :  { %v641_v61 = vpop.f32.mrf.mxu3 }
 0x986   :  { %v642_v62 = vadd.f32 %v641_v61, %v620_v60 }
 0x988   :  { %v644_v63 = vmin.f32 %v642_v62, %v1298_v18 }
 0x98a   :  { %v645_v1 = vmax.f32 %v644_v63, %v1302_v21 }
 0x98c   :  { %v646_v3 = vsub.f32 %v642_v62, %v645_v1 }
 0x98e   :  { %1143 = vmatmul.msk.f32.vlgmr.msrb.gmra.mxu0 %vm48_vm0, %v646_v3 }
 0x98f   :  { %865 = vmatpush.msrb.mxu0 %v1203_v0 }
 0x991   :  { %866 = vmatpush.msrb.mxu0 %v1211_v2 }
 0x993   :  { %867 = vmatpush.msrb.mxu0 %v1220_v4 }
 0x995   :  { %868 = vmatpush.msrb.mxu0 %v1239_v8 }
 0xa0b   :  { %v667_v5 = vpop.f32.mrf.mxu0 }
 0xa0c   :  { %v668_v9 = vadd.f32 %v667_v5, %v620_v60 }
 0xa0e   :  { %v670_v10 = vmin.f32 %v668_v9, %v1298_v18 }
 0xa10   :  { %v671_v11 = vmax.f32 %v670_v10, %v1302_v21 }
 0xa12   :  { %v672_v14 = vsub.f32 %v668_v9, %v671_v11 }
 0xa14   :  { %1144 = vmatmul.msk.f32.vlgmr.msra.gmra.mxu1 %vm48_vm0, %v672_v14 }
 0xa15   :  { %896 = vmatpush.msra.mxu1 %v1229_v6 }
 0xa17   :  { %897 = vmatpush.msra.mxu1 %v1234_v7 }
 0xa19   :  { %898 = vmatpush.msra.mxu1 %v1257_v12 }
 0xa1b   :  { %899 = vmatpush.msra.mxu1 %v1274_v13 }
 0xa91   :  { %v693_v16 = vpop.f32.mrf.mxu1 }
 0xa92   :  { %v694_v19 = vadd.f32 %v693_v16, %v620_v60 }
 0xa94   :  { %v696_v20 = vmin.f32 %v694_v19, %v1298_v18 }
 0xa96   :  { %v697_v22 = vmax.f32 %v696_v20, %v1302_v21 }
 0xa98   :  { %v698_v23 = vsub.f32 %v694_v19, %v697_v22 }
 0xa9a   :  { %1145 = vmatmul.msk.f32.vlgmr.msra.gmra.mxu2 %vm48_vm0, %v698_v23  ;;  %1146 = vmatmul.msk.f32.vlgmr.msra.gmra.mxu3 %vm48_vm0, %v698_v23 }
 0xa9b   :  { %922 = vmatpush.msra.mxu2 %v1229_v6  ;;  %948 = vmatpush.msra.mxu3 %v1229_v6 }
 0xa9d   :  { %923 = vmatpush.msra.mxu2 %v1234_v7  ;;  %949 = vmatpush.msra.mxu3 %v1234_v7 }
 0xa9f   :  { %924 = vmatpush.msra.mxu2 %v1257_v12  ;;  %950 = vmatpush.msra.mxu3 %v1257_v12 }
 0xaa1   :  { %925 = vmatpush.msra.mxu2 %v1274_v13  ;;  %951 = vmatpush.msra.mxu3 %v1274_v13 }
 0xb1d   :  { %v719_v24 = vpop.f32.mrf.mxu2  ;;  %v740_v25 = vpop.f32.mrf.mxu3 }
 0xb1e   :  { %722 = vst.msk [vmem:[%s1593_s3 + $0x8] sm:$0x3] %vm207_vm1, %v719_v24  ;;  %1147 = vmatmul.msk.f32.vlgmr.msra.gmra.mxu0 %vm48_vm0, %v740_v25  ;;  %v743_v26 = vmul.f32 %v740_v25, %v1293_v15 }
 0xb1f   :  { %974 = vmatpush.msra.mxu0 %v1317_v31 }
 0xb20   :  { %v745_v27 = vrot.slane %v743_v26, 6 }
 0xb21   :  { %975 = vmatpush.msra.mxu0 %v1324_v32 }
 0xb22   :  { %v747_v28 = vadd.f32 %v745_v27, %v1372_v44 }
 0xb23   :  { %976 = vmatpush.msra.mxu0 %v1331_v33 }
 0xb24   :  { %v749_v29 = vrot.slane %v747_v28, 2 }
 0xb25   :  { %977 = vmatpush.msra.mxu0 %v1338_v34 }
 0xb9b   :  { %v771_v30 = vpop.f32.mrf.mxu0 }
 0xb9c   :  { %v772_v35 = vadd.f32 %v771_v30, %v749_v29 }
 0xb9e   :  { %v774_v36 = vmin.f32 %v772_v35, %v1298_v18 }
 0xba0   :  { %v775_v37 = vmax.f32 %v774_v36, %v1302_v21 }
 0xba2   :  { %v776_v38 = vsub.f32 %v772_v35, %v775_v37 }
 0xba4   :  { %1148 = vmatmul.msk.f32.vlgmr.msrb.gmra.mxu1 %vm48_vm0, %v776_v38 }
 0xba5   :  { %995 = vmatpush.msrb.mxu1 %v1203_v0 }
 0xba7   :  { %996 = vmatpush.msrb.mxu1 %v1211_v2 }
 0xba9   :  { %997 = vmatpush.msrb.mxu1 %v1220_v4 }
 0xbab   :  { %998 = vmatpush.msrb.mxu1 %v1239_v8 }
 0xc21   :  { %v797_v39 = vpop.f32.mrf.mxu1 }
 0xc22   :  { %v798_v40 = vadd.f32 %v797_v39, %v749_v29 }
 0xc24   :  { %v800_v41 = vmin.f32 %v798_v40, %v1298_v18 }
 0xc26   :  { %v801_v42 = vmax.f32 %v800_v41, %v1302_v21 }
 0xc28   :  { %v802_v43 = vsub.f32 %v798_v40, %v801_v42 }
 0xc2a   :  { %1149 = vmatmul.msk.f32.vlgmr.msrb.gmra.mxu2 %vm48_vm0, %v802_v43 }
 0xc2b   :  { %1026 = vmatpush.msrb.mxu2 %v1229_v6 }
 0xc2d   :  { %1027 = vmatpush.msrb.mxu2 %v1234_v7 }
 0xc2f   :  { %1028 = vmatpush.msrb.mxu2 %v1257_v12 }
 0xc31   :  { %1029 = vmatpush.msrb.mxu2 %v1274_v13 }
 0xcad   :  { %v823_v0 = vpop.f32.mrf.mxu2 }
 0xcae   :  { %v824_v2 = vadd.f32 %v823_v0, %v749_v29 }
 0xcb0   :  { %v826_v4 = vmin.f32 %v824_v2, %v1298_v18 }
 0xcb2   :  { %v827_v8 = vmax.f32 %v826_v4, %v1302_v21 }
 0xcb4   :  { %v828_v45 = vsub.f32 %v824_v2, %v827_v8 }
 0xcb6   :  { %1150 = vmatmul.msk.f32.vlgmr.msrb.gmra.mxu3 %vm48_vm0, %v828_v45  ;;  %1151 = vmatmul.msk.f32.vlgmr.msrb.gmra.mxu0 %vm48_vm0, %v828_v45 }
 0xcb7   :  { %1052 = vmatpush.msrb.mxu3 %v1229_v6  ;;  %1078 = vmatpush.msrb.mxu0 %v1229_v6 }
 0xcb9   :  { %1053 = vmatpush.msrb.mxu3 %v1234_v7  ;;  %1079 = vmatpush.msrb.mxu0 %v1234_v7 }
 0xcbb   :  { %1054 = vmatpush.msrb.mxu3 %v1257_v12  ;;  %1080 = vmatpush.msrb.mxu0 %v1257_v12 }
 0xcbd   :  { %1055 = vmatpush.msrb.mxu3 %v1274_v13  ;;  %1081 = vmatpush.msrb.mxu0 %v1274_v13 }
 0xd33   :  { %v870_v46 = vpop.f32.mrf.mxu0 }
 0xd34   :  { %1152 = vmatmul.msk.f32.vlgmr.msra.gmra.mxu1 %vm48_vm0, %v870_v46  ;;  %v873_v7 = vmul.f32 %v870_v46, %v1293_v15 }
 0xd35   :  { %1104 = vmatpush.msra.mxu1 %v1317_v31 }
 0xd36   :  { %v875_v12 = vrot.slane %v873_v7, 4 }
 0xd37   :  { %1105 = vmatpush.msra.mxu1 %v1324_v32 }
 0xd38   :  { %v877_v13 = vadd.f32 %v875_v12, %v1372_v44 }
 0xd39   :  { %v849_v6 = vpop.f32.mrf.mxu3  ;;  %1106 = vmatpush.msra.mxu1 %v1331_v33 }
 0xd3a   :  { %852 = vst.msk [vmem:[%s1593_s3 + $0xa] sm:$0x3] %vm207_vm1, %v849_v6  ;;  %v879_v47 = vrot.slane %v877_v13, 4 }
 0xd3b   :  { %1107 = vmatpush.msra.mxu1 %v1338_v34 }
 0xdb1   :  { %v901_v48 = vpop.f32.mrf.mxu1 }
 0xdb2   :  { %v902_v31 = vadd.f32 %v901_v48, %v879_v47 }
 0xdb4   :  { %v904_v32 = vmin.f32 %v902_v31, %v1298_v18 }
 0xdb6   :  { %v905_v17 = vmax.f32 %v904_v32, %v1302_v21 }
 0xdb8   :  { %v906_v33 = vsub.f32 %v902_v31, %v905_v17 }
 0xdba   :  { %1153 = vmatmul.msk.f32.vlgmr.msra.gmra.mxu2 %vm48_vm0, %v906_v33 }
 0xe3d   :  { %v927_v49 = vpop.f32.mrf.mxu2 }
 0xe3e   :  { %v928_v50 = vadd.f32 %v927_v49, %v879_v47 }
 0xe40   :  { %v930_v51 = vmin.f32 %v928_v50, %v1298_v18 }
 0xe42   :  { %v931_v34 = vmax.f32 %v930_v51, %v1302_v21 }
 0xe44   :  { %v932_v52 = vsub.f32 %v928_v50, %v931_v34 }
 0xe46   :  { %1154 = vmatmul.msk.f32.vlgmr.msra.gmra.mxu3 %vm48_vm0, %v932_v52 }
 0xec9   :  { %v953_v53 = vpop.f32.mrf.mxu3 }
 0xeca   :  { %v954_v54 = vadd.f32 %v953_v53, %v879_v47 }
 0xecc   :  { %v956_v55 = vmin.f32 %v954_v54, %v1298_v18 }
 0xece   :  { %v957_v56 = vmax.f32 %v956_v55, %v1302_v21 }
 0xed0   :  { %v958_v57 = vsub.f32 %v954_v54, %v957_v56 }
 0xed2   :  { %1155 = vmatmul.msk.f32.vlgmr.msra.gmra.mxu0 %vm48_vm0, %v958_v57  ;;  %1156 = vmatmul.msk.f32.vlgmr.msrb.gmra.mxu1 %vm48_vm0, %v958_v57 }
 0xf4f   :  { %v979_v58 = vpop.f32.mrf.mxu0  ;;  %v1000_v59 = vpop.f32.mrf.mxu1 }
 0xf50   :  { %982 = vst.msk [vmem:[%s1593_s3 + $0xc] sm:$0x3] %vm207_vm1, %v979_v58  ;;  %1157 = vmatmul.msk.f32.vlgmr.msrb.gmra.mxu2 %vm48_vm0, %v1000_v59  ;;  %v1003_v60 = vmul.f32 %v1000_v59, %v1293_v15 }
 0xf52   :  { %v1005_v61 = vrot.slane %v1003_v60, 2 }
 0xf54   :  { %v1007_v62 = vadd.f32 %v1005_v61, %v1372_v44 }
 0xf56   :  { %v1009_v63 = vrot.slane %v1007_v62, 6 }
 0xfd3   :  { %v1031_v1 = vpop.f32.mrf.mxu2 }
 0xfd4   :  { %v1032_v3 = vadd.f32 %v1031_v1, %v1009_v63 }
 0xfd6   :  { %v1034_v5 = vmin.f32 %v1032_v3, %v1298_v18 }
 0xfd8   :  { %v1035_v9 = vmax.f32 %v1034_v5, %v1302_v21 }
 0xfda   :  { %v1036_v10 = vsub.f32 %v1032_v3, %v1035_v9 }
 0xfdc   :  { %1158 = vmatmul.msk.f32.vlgmr.msrb.gmra.mxu3 %vm48_vm0, %v1036_v10 }
0x105f   :  { %v1057_v11 = vpop.f32.mrf.mxu3 }
0x1060   :  { %v1058_v14 = vadd.f32 %v1057_v11, %v1009_v63 }
0x1062   :  { %v1060_v16 = vmin.f32 %v1058_v14, %v1298_v18 }
0x1064   :  { %v1061_v19 = vmax.f32 %v1060_v16, %v1302_v21 }
0x1066   :  { %v1062_v15 = vsub.f32 %v1058_v14, %v1061_v19 }
0x1068   :  { %1159 = vmatmul.msk.f32.vlgmr.msrb.gmra.mxu0 %vm48_vm0, %v1062_v15 }
0x10e5   :  { %v1083_v44 = vpop.f32.mrf.mxu0 }
0x10e6   :  { %v1084_v20 = vadd.f32 %v1083_v44, %v1009_v63 }
0x10e8   :  { %v1086_v22 = vmin.f32 %v1084_v20, %v1298_v18 }
0x10ea   :  { %v1087_v23 = vmax.f32 %v1086_v22, %v1302_v21 }
0x10ec   :  { %v1088_v24 = vsub.f32 %v1084_v20, %v1087_v23 }
0x10ee   :  { %1160 = vmatmul.msk.f32.vlgmr.msra.gmra.mxu1 %vm48_vm0, %v1088_v24 }
0x116b   :  { %v1109_v25 = vpop.f32.mrf.mxu1 }
0x116c   :  { %1112 = vst.msk [vmem:[%s1593_s3 + $0xe] sm:$0x3] %vm207_vm1, %v1109_v25 }
0x116d   :  { %1117 = vsyncpa [#allocation3], 1 }

</bundles_post_ra>
